<compile_context>
chip_gen: v6e
topology: v6e:2x2x1
jax: 0.10.0
libtpu: 0.0.40
codegen_flags: <defaults>
</compile_context>

<pallas_src>
import numpy as np
import jax
import jax.numpy as jnp
from jax.experimental import pallas as pl
from jax.experimental.pallas import tpu as pltpu

LANES = 128


# ----------------------------------------------------------------------------
# Table construction (mirrors RotaryPositionalEmbeddings._calculate_cos_sin_components).
# ----------------------------------------------------------------------------
def make_cos_sin_components(dim, seq_len, dim_embedding_pct, base, offset=0):
    eff = int(dim * dim_embedding_pct)
    # base ** (-2 * k) for k = 1 .. eff//2  (faithful to the reference module)
    freqs = jnp.asarray(base, jnp.float32) ** (
        -2.0 * jnp.arange(1, eff // 2 + 1, dtype=jnp.float32))        # (eff//2,)
    freqs2 = jnp.repeat(freqs, 2)                                     # (eff,)
    pos = jnp.arange(1 + offset, seq_len + 1 + offset, dtype=jnp.float32)
    thetas = freqs2[:, None] * pos[None, :]                           # (eff, seq_len)
    return jnp.cos(thetas), jnp.sin(thetas)


# Cache: tables are per-(module config, S, dtype), not per-forward.
_TABLE_CACHE = {}


def _get_tables(dim, seq_len, dim_embedding_pct, base, S, D, dtype):
    key = (dim, seq_len, float(dim_embedding_pct), base, S, D,
           jnp.dtype(dtype).name)
    if key not in _TABLE_CACHE:
        cos_c, sin_c = make_cos_sin_components(dim, seq_len,
                                               dim_embedding_pct, base)
        cos_tab = cos_c[:S, :] if S < seq_len else cos_c               # (S, D)
        sin_tab = sin_c[:S, :] if S < seq_len else sin_c
        assert cos_tab.shape == (S, D), (
            "reference forward requires dim == seq_len for its broadcast")
        # Fold the pair-swap sign into the sin table:
        #   out[d] = cos[d]*x[d] + sin_signed[d] * x_pair[d]
        #   sin_signed[d] = -sin[d] (even d), +sin[d] (odd d)
        sign = jnp.where(jnp.arange(D) % 2 == 1, 1.0, -1.0).astype(jnp.float32)
        sin_signed = sin_tab * sign[None, :]
        Rc = (S * D) // LANES
        cos_flat = cos_tab.reshape(Rc, LANES).astype(dtype)
        sin_flat = sin_signed.reshape(Rc, LANES).astype(dtype)
        _TABLE_CACHE[key] = (cos_flat, sin_flat)
    return _TABLE_CACHE[key]


# ----------------------------------------------------------------------------
# Kernel.
#   x block:   (G, Rt, 128)   lane-dense slabs of G (b,h) heads
#   tables:    (Rt, 128)      broadcast along the leading G dim
#   even lane: out = cos*x[d] - sin*x[d+1]     (x_next selected)
#   odd  lane: out = cos*x[d] + sin*x[d-1]     (x_prev selected)
# Pairs never straddle a 128-lane row (D and 128 are even), so the cyclic
# roll wraparound lanes are never selected by the parity mask.
# ----------------------------------------------------------------------------
def rope_kernel(x_ref, cos_ref, sin_ref, o_ref):
    x = x_ref[...]                                     # (G, Rt, 128)
    x_next = pltpu.roll(x, shift=LANES - 1, axis=2)    # x_next[j] = x[(j+1)%128]
    x_prev = pltpu.roll(x, shift=1, axis=2)            # x_prev[j] = x[(j-1)%128]
    lane = jax.lax.broadcasted_iota(jnp.int32, (x.shape[1], LANES), 1)
    odd = (lane & 1) == 1                              # (Rt, 128) lane parity
    x_pair = jnp.where(odd, x_prev, x_next)            # broadcast over G
    o_ref[...] = (cos_ref[...] * x + sin_ref[...] * x_pair).astype(o_ref.dtype)


# ----------------------------------------------------------------------------
# Block-sizing helpers.
# ----------------------------------------------------------------------------
def _sublane_pack(itemsize):
    return {4: 8, 2: 16, 1: 32}.get(itemsize, 8)


def _largest_divisor(n, cap, multiple):
    cap = max(1, min(n, cap))
    for d in range(cap, 0, -1):
        if n % d == 0 and d % multiple == 0:
            return d
    return None


# ----------------------------------------------------------------------------
# Wrapper (forward pass of RotaryPositionalEmbeddings).
# ----------------------------------------------------------------------------
def rotary_positional_embeddings(x, *, dim, seq_len, dim_embedding_pct=1.0,
                                 base=10000):
    B, H, S, D = x.shape
    eff = int(dim * dim_embedding_pct)

    # TODO(synk): the dim_embedding_pct < 1.0 branch of the reference module
    # multiplies mismatched shapes and raises in PyTorch for any
    # non-degenerate input, so only the (working) pct == 1.0 path exists here.
    assert dim_embedding_pct == 1.0 and eff == dim and D == dim
    assert D % 2 == 0, "rotary embedding requires an even dim"
    assert S <= seq_len
    assert (S * D) % LANES == 0, (
        "TODO(synk): S*D must be a multiple of 128 for the lane-dense path")

    itemsize = x.dtype.itemsize
    cos_flat, sin_flat = _get_tables(dim, seq_len, dim_embedding_pct, base,
                                     S, D, x.dtype)                 # (Rc, 128)

    BH = B * H
    Rc = (S * D) // LANES                 # rows per (b, h) slab

    # Generation heuristics (v7x: 2 TCs, 64 MiB VMEM/TC; v5e/v6e: 1 TC, 128 MiB).
    try:
        kind = jax.devices()[0].device_kind.lower()
    except Exception:
        kind = ""
    is_v7 = "v7" in kind

    sub = _sublane_pack(itemsize)
    slab_bytes = Rc * LANES * itemsize
    target_blk = (4 << 20) if is_v7 else (8 << 20)

    # How many whole (b,h) slabs per block.
    G = max(1, min(BH, target_blk // max(1, slab_bytes)))
    while BH % G:
        G -= 1

    # If a single slab is already bigger than the target, tile rows *within*
    # the slab (never fall back to the whole array as one block).
    Rt = Rc
    if G == 1 and slab_bytes > target_blk:
        cap_rows = max(sub, target_blk // (LANES * itemsize))
        cand = _largest_divisor(Rc, cap_rows, multiple=sub)
        Rt = cand if cand is not None else Rc

    grid_bh = BH // G
    grid_r = Rc // Rt

    # v7x: prefer an even number of >= 4 grid steps so both TensorCores get
    # balanced work via dimension_semantics=("parallel", ...).
    if is_v7 and grid_r == 1 and BH >= 4 and (grid_bh < 4 or grid_bh % 2):
        for g in range(G, 0, -1):
            if BH % g == 0:
                steps = BH // g
                if steps >= 4 and steps % 2 == 0:
                    G, grid_bh = g, steps
                    break

    # VMEM budget: double-buffered in + out blocks, double-buffered tables.
    Rt_pad = -(-Rt // sub) * sub
    blk_bytes = G * Rt_pad * LANES * itemsize
    tab_bytes = 2 * Rt_pad * LANES * itemsize
    vmem_need = 4 * blk_bytes + 2 * tab_bytes + (2 << 20)
    vmem_cap = (48 << 20) if is_v7 else (100 << 20)
    vmem_limit = int(min(max(vmem_need, 8 << 20), vmem_cap))

    n_elems = B * H * S * D
    cost = pl.CostEstimate(
        flops=5 * n_elems,
        transcendentals=0,
        bytes_accessed=2 * n_elems * itemsize + 2 * S * D * itemsize)

    xf = x.reshape(BH, Rc, LANES)

    # TODO(synk): callers that apply RoPE in place on q/k can add
    # input_output_aliases={0: 0} to elide the second HBM buffer.
    out = pl.pallas_call(
        rope_kernel,
        out_shape=jax.ShapeDtypeStruct((BH, Rc, LANES), x.dtype),
        grid_spec=pltpu.PrefetchScalarGridSpec(
            num_scalar_prefetch=0,
            grid=(grid_bh, grid_r),
            in_specs=[
                pl.BlockSpec((G, Rt, LANES), lambda i, r: (i, r, 0)),   # x
                pl.BlockSpec((Rt, LANES), lambda i, r: (r, 0)),          # cos
                pl.BlockSpec((Rt, LANES), lambda i, r: (r, 0)),          # signed sin
            ],
            out_specs=pl.BlockSpec((G, Rt, LANES), lambda i, r: (i, r, 0)),
        ),
        compiler_params=pltpu.CompilerParams(
            dimension_semantics=("parallel", "parallel"),
            vmem_limit_bytes=vmem_limit),
        cost_estimate=cost,
    )(xf, cos_flat, sin_flat)

    return out.reshape(B, H, S, D)


# ----------------------------------------------------------------------------
# Pure-JAX reference mirroring the PyTorch forward (index-gather formulation).
# ----------------------------------------------------------------------------
def rope_reference(x, cos_tab, sin_tab):
    D = x.shape[-1]
    ixs_sin_neg = 2 * np.arange(D // 2)
    ixs_sin = np.empty(D, dtype=np.int32)
    ixs_sin[ixs_sin_neg] = ixs_sin_neg + 1
    ixs_sin[ixs_sin_neg + 1] = ixs_sin_neg

    x_cos = cos_tab[None, None] * x
    x_sin = jnp.take(x, jnp.asarray(ixs_sin), axis=-1)
    sign = jnp.ones((D,), x.dtype).at[jnp.asarray(ixs_sin_neg)].set(-1.0)
    x_sin = x_sin * sign * sin_tab[None, None]
    return x_cos + x_sin


if __name__ == "__main__":
    B, H, S, D = 2, 4, 32, 32           # module requires dim == seq_len == D == S
    dim, seq_len, pct, base = D, S, 1.0, 2

    key = jax.random.PRNGKey(0)
    x = jax.random.normal(key, (B, H, S, D), dtype=jnp.float32)

    out = rotary_positional_embeddings(
        x, dim=dim, seq_len=seq_len, dim_embedding_pct=pct, base=base)
    out = jax.block_until_ready(out)

    cos_c, sin_c = make_cos_sin_components(dim, seq_len, pct, base)
    ref = rope_reference(x, cos_c, sin_c)

    assert out.shape == x.shape and out.dtype == x.dtype
    np.testing.assert_allclose(np.asarray(out), np.asarray(ref),
                               rtol=1e-5, atol=1e-5)
    print("KERNEL_OK")
</pallas_src>

<mosaic_0001>
module attributes {stable_mosaic.version = 11 : i64} {
  func.func @rope_kernel(%arg0: i32, %arg1: i32, %arg2: memref<8x8x128xf32, #tpu.memory_space<vmem>>, %arg3: memref<8x128xf32, #tpu.memory_space<vmem>>, %arg4: memref<8x128xf32, #tpu.memory_space<vmem>>, %arg5: memref<8x8x128xf32, #tpu.memory_space<vmem>>) attributes {dimension_semantics = [#tpu.dimension_semantics<parallel>, #tpu.dimension_semantics<parallel>], iteration_bounds = array<i64: 1, 1>, scalar_prefetch = 0 : i64, scratch_operands = 0 : i64, tpu.core_type = #tpu.core_type<tc>, window_params = [{transform_indices = @transform_0, window_bounds = array<i64: 8, 8, 128>}, {transform_indices = @transform_1, window_bounds = array<i64: 8, 128>}, {transform_indices = @transform_2, window_bounds = array<i64: 8, 128>}, {transform_indices = @transform_3, window_bounds = array<i64: 8, 8, 128>}]} {
    %c0 = arith.constant 0 : index
    %c0_0 = arith.constant 0 : index
    %c0_1 = arith.constant 0 : index
    %0 = vector.load %arg2[%c0, %c0_0, %c0_1] : memref<8x8x128xf32, #tpu.memory_space<vmem>>, vector<8x8x128xf32>
    %c127_i32 = arith.constant 127 : i32
    %1 = tpu.dynamic_rotate %0 by %c127_i32 dim 2 : vector<8x8x128xf32>, i32 -> vector<8x8x128xf32>
    %c1_i32 = arith.constant 1 : i32
    %2 = tpu.dynamic_rotate %0 by %c1_i32 dim 2 : vector<8x8x128xf32>, i32 -> vector<8x8x128xf32>
    %3 = tpu.iota {dimensions = array<i32: 1>} : vector<8x128xi32>
    %c1_i32_2 = arith.constant 1 : i32
    %4 = vector.broadcast %c1_i32_2 : i32 to vector<8x128xi32>
    %5 = arith.andi %3, %4 : vector<8x128xi32>
    %c1_i32_3 = arith.constant 1 : i32
    %6 = vector.broadcast %c1_i32_3 : i32 to vector<8x128xi32>
    %7 = arith.cmpi eq, %5, %6 : vector<8x128xi32>
    %8 = vector.shape_cast %7 : vector<8x128xi1> to vector<1x8x128xi1>
    %9 = vector.broadcast %8 : vector<1x8x128xi1> to vector<8x8x128xi1>
    %10 = arith.select %9, %2, %1 : vector<8x8x128xi1>, vector<8x8x128xf32>
    %c0_4 = arith.constant 0 : index
    %c0_5 = arith.constant 0 : index
    %11 = vector.load %arg3[%c0_4, %c0_5] : memref<8x128xf32, #tpu.memory_space<vmem>>, vector<8x128xf32>
    %12 = vector.shape_cast %11 : vector<8x128xf32> to vector<1x8x128xf32>
    %13 = vector.broadcast %12 : vector<1x8x128xf32> to vector<8x8x128xf32>
    %14 = arith.mulf %13, %0 : vector<8x8x128xf32>
    %c0_6 = arith.constant 0 : index
    %c0_7 = arith.constant 0 : index
    %15 = vector.load %arg4[%c0_6, %c0_7] : memref<8x128xf32, #tpu.memory_space<vmem>>, vector<8x128xf32>
    %16 = vector.shape_cast %15 : vector<8x128xf32> to vector<1x8x128xf32>
    %17 = vector.broadcast %16 : vector<1x8x128xf32> to vector<8x8x128xf32>
    %18 = arith.mulf %17, %10 : vector<8x8x128xf32>
    %19 = arith.addf %14, %18 : vector<8x8x128xf32>
    %c0_8 = arith.constant 0 : index
    %c0_9 = arith.constant 0 : index
    %c0_10 = arith.constant 0 : index
    %20 = vector.load %arg5[%c0_8, %c0_9, %c0_10] : memref<8x8x128xf32, #tpu.memory_space<vmem>>, vector<8x8x128xf32>
    tpu.vector_store %arg5[%c0_8, %c0_9, %c0_10], %19 {strides = array<i32>} : memref<8x8x128xf32, #tpu.memory_space<vmem>>, vector<8x8x128xf32>,
    return
  }
  func.func @transform_0(%arg0: i32, %arg1: i32) -> (i32, i32, i32) {
    %c0_i32 = arith.constant 0 : i32
    %c0_i32_0 = arith.constant 0 : i32
    return %arg0, %arg1, %c0_i32 : i32, i32, i32
  }
  func.func @transform_1(%arg0: i32, %arg1: i32) -> (i32, i32) {
    %c0_i32 = arith.constant 0 : i32
    %c0_i32_0 = arith.constant 0 : i32
    return %arg1, %c0_i32 : i32, i32
  }
  func.func @transform_2(%arg0: i32, %arg1: i32) -> (i32, i32) {
    %c0_i32 = arith.constant 0 : i32
    %c0_i32_0 = arith.constant 0 : i32
    return %arg1, %c0_i32 : i32, i32
  }
  func.func @transform_3(%arg0: i32, %arg1: i32) -> (i32, i32, i32) {
    %c0_i32 = arith.constant 0 : i32
    %c0_i32_0 = arith.constant 0 : i32
    return %arg0, %arg1, %c0_i32 : i32, i32, i32
  }
}

</mosaic_0001>

<bundles_post_ra>
// kernel: tpu_custom_call.1
= control target key start
LH: loop header
LB: loop body
LE: loop exit
PB: predicated region body
PF: predicated region fallthrough
CT: control target
= control target key end

     0   :  { %8 = vsyncpa [#allocation3], 0  ;;  %s318_s0 = inlined_call_operand.hbm [shape: f32[8,8,128], index: 0, kind: input, shape index: {}]   ;;  %s319_s1 = inlined_call_operand.hbm [shape: f32[8,128], index: 1, kind: input, shape index: {}]   ;;  %s320_s2 = inlined_call_operand.hbm [shape: f32[8,128], index: 2, kind: input, shape index: {}]   ;;  %s321_s3 = inlined_call_operand.hbm [shape: f32[8,8,128], index: 3, kind: output, shape index: {}]  }
   0x1   :  { %9 = vsyncpa [#allocation6], 0 }
   0x2   :  { %10 = vsyncpa [#allocation4], 0  ;;  %s252_s12 = smov [#allocation5]   ;;  %s253_s14 = smov [#allocation2]  }
   0x3   :  { %s29_s13 = sshll.u32 %s252_s12, 4  ;;  %s16_s15 = sshll.u32 %s253_s14, 4  ;;  %s30_s13 = int_to_ptr.vmem [resolvable:$true] %s29_s13  ;;  %s17_s15 = int_to_ptr.vmem [resolvable:$true] %s16_s15 }
   0x4   :  { %s174_s16 = scalar_lea.vmem %s30_s13, 128  ;;  %p179_p1 = scmp.lt.s32.totalorder %s30_s13, %s30_s13 }
   0x5   :  { %p175_p0 = scmp.ne.s32.totalorder %s30_s13, %s174_s16  ;;  %p180_p2 = scmp.lt.s32.totalorder %s174_s16, %s174_s16 }
   0x7   :  { %p181_p3 = por %p180_p2, %p179_p1 }
   0x9   :  { %p182_p4 = pnand %p181_p3, %p175_p0 }
   0xb   :  { %185 = shalt.err (!%p182_p4)
}
   0xc   :  { %32 = dma.hbm_to_vmem [thread:$0]  %s319_s1, 128, %s30_s13, [#allocation6]  }
   0xd   :  { %s194_s19 = scalar_lea.vmem %s17_s15, 1024  ;;  %p199_p6 = scmp.lt.s32.totalorder %s17_s15, %s17_s15 }
   0xe   :  { %p195_p5 = scmp.ne.s32.totalorder %s17_s15, %s194_s19  ;;  %p200_p7 = scmp.lt.s32.totalorder %s194_s19, %s194_s19 }
  0x10   :  { %p201_p8 = por %p200_p7, %p199_p6 }
  0x12   :  { %p202_p9 = pnand %p201_p8, %p195_p5 }
  0x14   :  { %205 = shalt.err (!%p202_p9)
}
  0x15   :  { %s254_s20 = smov 128   ;;  %s255_s21 = smov 8  }
  0x16   :  { %22 = dma.hbm_to_vmem [thread:$0]  %s318_s0, 1024, %s17_s15, [#allocation3], %s254_s20, %s254_s20, %s255_s21  }
  0x17   :  { %s256_s24 = smov [#allocation7]  }
  0x18   :  { %s39_s25 = sshll.u32 %s256_s24, 4  ;;  %s40_s25 = int_to_ptr.vmem [resolvable:$true] %s39_s25 }
  0x19   :  { %s214_s1 = scalar_lea.vmem %s40_s25, 128  ;;  %p219_p11 = scmp.lt.s32.totalorder %s40_s25, %s40_s25 }
  0x1a   :  { %p215_p10 = scmp.ne.s32.totalorder %s40_s25, %s214_s1  ;;  %p220_p12 = scmp.lt.s32.totalorder %s214_s1, %s214_s1 }
  0x1c   :  { %p221_p13 = por %p220_p12, %p219_p11 }
  0x1e   :  { %p222_p0 = pnand %p221_p13, %p215_p10 }
  0x20   :  { %225 = shalt.err (!%p222_p0)
}
  0x21   :  { %42 = dma.hbm_to_vmem [thread:$0]  %s320_s2, 128, %s40_s25, [#allocation6]  }
  0x22   :  { %246 = dma.done.wait [#allocation3], 1024  }
  0x23   :  { %247 = vsyncadd [#allocation3], 4294966272 }
  0x24   :  { %248 = dma.done.wait [#allocation6], 256  }
  0x25   :  { %249 = vsyncadd [#allocation6], 4294967040  ;;  %v54_v0 = vld [vmem:[#allocation2 + $0x10] sm:$0xff]  ;;  %v52_v1 = vld [vmem:[#allocation2] sm:$0xff]  ;;  %s257_s0 = smov 127   ;;  %s258_s2 = smov 1   ;;  %v92_v10 = vlaneseq }
  0x26   :  { %64 = vrot.lane.b32.xlu1 %v54_v0, %s257_s0  ;;  %60 = vrot.lane.b32.xlu0 %v52_v1, %s257_s0  ;;  %v55_v2 = vld [vmem:[#allocation2 + $0x18] sm:$0xff]  ;;  %v53_v3 = vld [vmem:[#allocation2 + $0x8] sm:$0xff]  ;;  %v56_v5 = vld [vmem:[#allocation2 + $0x20] sm:$0xff]  ;;  %s259_s28 = smov [#allocation8]  }
  0x27   :  { %v57_v4 = vld [vmem:[#allocation2 + $0x28] sm:$0xff]  ;;  %v59_v6 = vld [vmem:[#allocation2 + $0x38] sm:$0xff]  ;;  %v58_v7 = vld [vmem:[#allocation2 + $0x30] sm:$0xff]  ;;  %v93_v13 = vand.u32 127, %v92_v10  ;;  %s145_s29 = sshll.u32 %s259_s28, 4  ;;  %s146_s29 = int_to_ptr.vmem [resolvable:$true] %s145_s29 }
  0x28   :  { %v106_v19 = vld [vmem:[#allocation5] sm:$0xff]  ;;  %v115_v21 = vld [vmem:[#allocation7] sm:$0xff]  ;;  %s226_s30 = scalar_lea.vmem %s146_s29, 1024  ;;  %p231_p2 = scmp.lt.s32.totalorder %s146_s29, %s146_s29 }
  0x29   :  { %v94_v16 = vand.u32 1, %v93_v13  ;;  %v107_v22 = vmul.f32 %v106_v19, %v52_v1  ;;  %v108_v23 = vmul.f32 %v106_v19, %v53_v3  ;;  %v109_v30 = vmul.f32 %v106_v19, %v54_v0  ;;  %p227_p1 = scmp.ne.s32.totalorder %s146_s29, %s226_s30  ;;  %p232_p3 = scmp.lt.s32.totalorder %s226_s30, %s226_s30 }
  0x2a   :  { %66 = vrot.lane.b32.xlu1 %v55_v2, %s257_s0  ;;  %62 = vrot.lane.b32.xlu0 %v53_v3, %s257_s0  ;;  %v110_v31 = vmul.f32 %v106_v19, %v55_v2  ;;  %v112_v40 = vmul.f32 %v106_v19, %v57_v4  ;;  %v111_v41 = vmul.f32 %v106_v19, %v56_v5 }
  0x2b   :  { %vm292_vm0 = vcmp.eq.s32.totalorder %v94_v16, 1  ;;  %v114_v50 = vmul.f32 %v106_v19, %v59_v6  ;;  %v113_v51 = vmul.f32 %v106_v19, %v58_v7  ;;  %p233_p4 = por %p232_p3, %p231_p2 }
  0x2d   :  { %p234_p5 = pnand %p233_p4, %p227_p1 }
  0x2e   :  { %70 = vrot.lane.b32.xlu1 %v57_v4, %s257_s0  ;;  %68 = vrot.lane.b32.xlu0 %v56_v5, %s257_s0 }
  0x32   :  { %74 = vrot.lane.b32.xlu1 %v59_v6, %s257_s0  ;;  %72 = vrot.lane.b32.xlu0 %v58_v7, %s257_s0 }
  0x36   :  { %78 = vrot.lane.b32.xlu1 %v53_v3, %s258_s2  ;;  %76 = vrot.lane.b32.xlu0 %v52_v1, %s258_s2 }
  0x3a   :  { %82 = vrot.lane.b32.xlu1 %v55_v2, %s258_s2  ;;  %80 = vrot.lane.b32.xlu0 %v54_v0, %s258_s2 }
  0x3e   :  { %86 = vrot.lane.b32.xlu1 %v57_v4, %s258_s2  ;;  %84 = vrot.lane.b32.xlu0 %v56_v5, %s258_s2 }
  0x42   :  { %90 = vrot.lane.b32.xlu1 %v59_v6, %s258_s2  ;;  %88 = vrot.lane.b32.xlu0 %v58_v7, %s258_s2 }
  0x98   :  { %v65_v8 = vpop.permute.xlu1 %64  ;;  %v61_v9 = vpop.permute.xlu0 %60 }
  0x9c   :  { %v67_v11 = vpop.permute.xlu1 %66  ;;  %v63_v12 = vpop.permute.xlu0 %62 }
  0xa0   :  { %v71_v14 = vpop.permute.xlu1 %70  ;;  %v69_v15 = vpop.permute.xlu0 %68 }
  0xa4   :  { %v75_v17 = vpop.permute.xlu1 %74  ;;  %v73_v18 = vpop.permute.xlu0 %72 }
  0xa8   :  { %v79_v24 = vpop.permute.xlu1 %78  ;;  %v77_v25 = vpop.permute.xlu0 %76 }
  0xa9   :  { %v99_v26 = vsel %vm292_vm0, %v79_v24, %v63_v12  ;;  %v98_v27 = vsel %vm292_vm0, %v77_v25, %v61_v9 }
  0xaa   :  { %v117_v28 = vmul.f32 %v115_v21, %v99_v26  ;;  %v116_v29 = vmul.f32 %v115_v21, %v98_v27 }
  0xac   :  { %v125_v32 = vadd.f32 %v117_v28, %v108_v23  ;;  %v124_v33 = vadd.f32 %v116_v29, %v107_v22  ;;  %v83_v34 = vpop.permute.xlu1 %82  ;;  %v81_v35 = vpop.permute.xlu0 %80 }
  0xad   :  { %v101_v36 = vsel %vm292_vm0, %v83_v34, %v67_v11  ;;  %v100_v37 = vsel %vm292_vm0, %v81_v35, %v65_v8 }
  0xae   :  { %133 = vst [vmem:[#allocation8 + $0x8] sm:$0xff] %v125_v32  ;;  %132 = vst [vmem:[#allocation8] sm:$0xff] %v124_v33  ;;  %v119_v38 = vmul.f32 %v115_v21, %v101_v36  ;;  %v118_v39 = vmul.f32 %v115_v21, %v100_v37 }
  0xb0   :  { %v127_v42 = vadd.f32 %v119_v38, %v110_v31  ;;  %v126_v43 = vadd.f32 %v118_v39, %v109_v30  ;;  %v87_v44 = vpop.permute.xlu1 %86  ;;  %v85_v45 = vpop.permute.xlu0 %84 }
  0xb1   :  { %v103_v46 = vsel %vm292_vm0, %v87_v44, %v71_v14  ;;  %v102_v47 = vsel %vm292_vm0, %v85_v45, %v69_v15 }
  0xb2   :  { %135 = vst [vmem:[#allocation8 + $0x18] sm:$0xff] %v127_v42  ;;  %134 = vst [vmem:[#allocation8 + $0x10] sm:$0xff] %v126_v43  ;;  %v121_v48 = vmul.f32 %v115_v21, %v103_v46  ;;  %v120_v49 = vmul.f32 %v115_v21, %v102_v47 }
  0xb4   :  { %v129_v52 = vadd.f32 %v121_v48, %v112_v40  ;;  %v128_v53 = vadd.f32 %v120_v49, %v111_v41  ;;  %v91_v54 = vpop.permute.xlu1 %90  ;;  %v89_v55 = vpop.permute.xlu0 %88 }
  0xb5   :  { %v105_v56 = vsel %vm292_vm0, %v91_v54, %v75_v17  ;;  %v104_v57 = vsel %vm292_vm0, %v89_v55, %v73_v18 }
  0xb6   :  { %137 = vst [vmem:[#allocation8 + $0x28] sm:$0xff] %v129_v52  ;;  %136 = vst [vmem:[#allocation8 + $0x20] sm:$0xff] %v128_v53  ;;  %v123_v58 = vmul.f32 %v115_v21, %v105_v56  ;;  %v122_v59 = vmul.f32 %v115_v21, %v104_v57 }
  0xb8   :  { %v131_v60 = vadd.f32 %v123_v58, %v114_v50  ;;  %v130_v61 = vadd.f32 %v122_v59, %v113_v51 }
  0xba   :  { %139 = vst [vmem:[#allocation8 + $0x38] sm:$0xff] %v131_v60  ;;  %138 = vst [vmem:[#allocation8 + $0x30] sm:$0xff] %v130_v61 }
  0xbb   :  { %237 = shalt.err (!%p234_p5)
}
  0xbc   :  { %151 = dma.vmem_to_hbm [thread:$0]  %s146_s29, 1024, %s321_s3, [#allocation4], %s254_s20, %s254_s20, %s255_s21  }
  0xbd   :  { %250 = dma.done.wait [#allocation4], 1024  }
  0xbe   :  { %251 = vsyncadd [#allocation4], 4294966272 }
  0xbf   :  { %155 = vsyncpa [#allocation3], 1 }
  0xc0   :  { %156 = vsyncpa [#allocation6], 1 }
  0xc1   :  { %157 = vsyncpa [#allocation4], 1 }

</bundles_post_ra>
